<compile_context>
chip_gen: v7x
topology: tpu7x:2x2x1
jax: 0.10.0
libtpu: 0.0.40
codegen_flags: <defaults>
</compile_context>

<pallas_src>
import functools

import jax
import jax.numpy as jnp
from jax import lax
from jax.experimental import pallas as pl
from jax.experimental.pallas import tpu as pltpu


_LANE = 128
_MAX_TILE_D = 16384          # <= 128 lane groups in the unrolled fold


def _round_up(x, m):
    return -(-x // m) * m


def _round_down(x, m):
    return (x // m) * m


def _cdiv(a, b):
    return -(-a // b)


def _divisors(n):
    out = set()
    i = 1
    while i * i <= n:
        if n % i == 0:
            out.add(i)
            out.add(n // i)
        i += 1
    return sorted(out)


def _default_vmem_budget_bytes():
    """Chip-aware budget for the double-buffered input working set."""
    try:
        kind = jax.devices()[0].device_kind.lower().replace(" ", "")
    except Exception:
        return 12 * 1024 * 1024
    if "v6" in kind:
        return 48 * 1024 * 1024          # 128 MiB physical; raise scoped limit
    if "7" in kind:
        return 36 * 1024 * 1024          # v7x: only 64 MiB physical per TC
    if "v5e" in kind or "v5lite" in kind:
        return 12 * 1024 * 1024          # 16 MiB default scoped VMEM
    if "v5" in kind:
        return 24 * 1024 * 1024
    return 12 * 1024 * 1024              # conservative fallback (v2/v3/v4/unknown)


def _div_loss_kernel(c1_ref, c2_ref, e1_ref, e2_ref, out_ref, acc_ref, *,
                     rows_true, cols_true, tile_rows, tile_d,
                     mask_rows, mask_cols, layer_count, noise_count):
    """Grid = (row tiles, feature tiles); feature axis iterates fastest.

    acc_ref is a narrow (tile_rows, 128) f32 accumulator shared across the
    whole grid (everything is globally summed, so per-row-tile zeroing is not
    needed).  The single cross-lane reduce, the tiny noise mean and the
    reciprocal run exactly once on the last grid step.
    """
    ri = pl.program_id(0)
    fj = pl.program_id(1)

    @pl.when(jnp.logical_and(ri == 0, fj == 0))
    def _init():
        acc_ref[...] = jnp.zeros_like(acc_ref)

    # Per-tile |chunk1 - chunk2|; inputs arrive in native dtype, cast here.
    diff = jnp.abs(c1_ref[...].astype(jnp.float32)
                   - c2_ref[...].astype(jnp.float32))

    # Zero the unspecified OOB lanes of ragged boundary blocks before
    # accumulating (compile-time flags; VALU has slack when HBM-bound).
    if mask_cols or mask_rows:
        valid = None
        if mask_cols:
            col = fj * tile_d + lax.broadcasted_iota(
                jnp.int32, (tile_rows, tile_d), 1)
            valid = col < cols_true
        if mask_rows:
            row = ri * tile_rows + lax.broadcasted_iota(
                jnp.int32, (tile_rows, tile_d), 0)
            rmask = row < rows_true
            valid = rmask if valid is None else jnp.logical_and(valid, rmask)
        diff = jnp.where(valid, diff, jnp.float32(0.0))

    # Fold the tile into 128-lane partial sums with vreg-aligned static
    # slices, then a single read-modify-write of the narrow accumulator.
    partial = diff[:, 0:_LANE]
    for k in range(1, tile_d // _LANE):
        partial = partial + diff[:, k * _LANE:(k + 1) * _LANE]
    acc_ref[...] += partial

    @pl.when(jnp.logical_and(ri == pl.num_programs(0) - 1,
                             fj == pl.num_programs(1) - 1))
    def _finalize():
        num = jnp.sum(acc_ref[...]) / jnp.float32(layer_count)
        e_diff = jnp.abs(e1_ref[...].astype(jnp.float32)
                         - e2_ref[...].astype(jnp.float32))
        den = jnp.sum(e_diff) / jnp.float32(noise_count)
        lz = num / den
        out_ref[0] = 1.0 / (lz + jnp.float32(1e-5))


def div_loss(noises, layer, *, vmem_budget_bytes=None):
    """Pallas implementation of DivLoss.forward(noises, layer) -> scalar f32."""
    if layer.ndim > 2:
        layer = layer.reshape((layer.shape[0], -1))
    if noises.ndim > 2:
        noises = noises.reshape((noises.shape[0], -1))
    b, d_true = layer.shape
    half = b // 2
    if half == 0 or half * 2 != b:
        raise ValueError(f"DivLoss requires an even batch size >= 2, got {b}.")
    if noises.shape[0] != b:
        raise ValueError("noises and layer must share the batch dimension.")

    if vmem_budget_bytes is None:
        vmem_budget_bytes = _default_vmem_budget_bytes()

    itemsize = jnp.dtype(layer.dtype).itemsize
    n_itemsize = jnp.dtype(noises.dtype).itemsize
    sublanes = max(8, 32 // itemsize)            # 8 f32, 16 bf16, 32 int8/fp8

    # --- sublane repacking (free contiguous reshape per chunk) --------------
    # The loss is a global sum over |c1 - c2|, so viewing each (half, D) chunk
    # as (half*g, D/g) is layout plumbing only.  Pick g dividing D so rows are
    # sublane-dense and close to rows_target (taller tiles -> bigger per-step
    # DMA at a bounded, unroll-friendly tile_d).
    rows_target = max(sublanes,
                      vmem_budget_bytes // (4 * itemsize * _MAX_TILE_D))
    g = 1
    if d_true >= _LANE:
        feas = [gg for gg in _divisors(d_true)
                if (half * gg) % sublanes == 0 and d_true // gg >= _LANE]
        if feas:
            g = min(feas, key=lambda gg: (abs(half * gg - rows_target),
                                          half * gg))
    rows = half * g
    cols = d_true // g

    lay3 = layer.reshape(2, rows, cols)          # free: contiguous view reshape
    noi3 = noises.reshape(2, half, -1)
    nz = noi3.shape[2]

    # --- tile selection directly from the VMEM budget ------------------------
    # Working set per (row, 128-lane) column: 2 chunks x 2 pipeline buffers.
    per_elem_bytes = 4 * itemsize
    if rows * _LANE * per_elem_bytes <= vmem_budget_bytes:
        tile_rows = rows
    else:
        # Row tiling path for very large batch halves.
        tile_rows = max(sublanes,
                        _round_down(vmem_budget_bytes // (_LANE * per_elem_bytes),
                                    sublanes))
        tile_rows = min(tile_rows, _round_up(rows, sublanes))
    n_row_tiles = _cdiv(rows, tile_rows)

    tile_d_cap = _round_down(vmem_budget_bytes // (tile_rows * per_elem_bytes),
                             _LANE)
    tile_d_cap = max(_LANE, min(tile_d_cap, _MAX_TILE_D))
    tile_d = min(tile_d_cap, _round_up(cols, _LANE))
    n_col_tiles = _cdiv(cols, tile_d)

    mask_cols = (cols % tile_d) != 0
    mask_rows = (rows % tile_rows) != 0

    # Actual VMEM working set -> scoped limit (raised on v6e, safe on v5e/v7x).
    working = (4 * tile_rows * tile_d * itemsize          # 2 chunks x 2 buffers
               + 4 * half * nz * n_itemsize               # resident noise blocks
               + tile_rows * _LANE * 4)                   # f32 accumulator
    vmem_limit = int(min(96 * 1024 * 1024,
                         max(32 * 1024 * 1024, working + (4 << 20))))

    n_layer = half * d_true
    n_noise = half * nz
    cost = pl.CostEstimate(
        flops=3 * n_layer + 3 * n_noise + 8,
        transcendentals=0,
        bytes_accessed=lay3.size * itemsize + noi3.size * n_itemsize + 4)

    kernel = functools.partial(
        _div_loss_kernel,
        rows_true=rows, cols_true=cols,
        tile_rows=tile_rows, tile_d=tile_d,
        mask_rows=mask_rows, mask_cols=mask_cols,
        layer_count=n_layer, noise_count=n_noise)

    chunk_block = (pl.Squeezed(), tile_rows, tile_d)
    noise_block = (pl.Squeezed(), half, nz)

    out = pl.pallas_call(
        kernel,
        out_shape=jax.ShapeDtypeStruct((1,), jnp.float32),
        grid_spec=pltpu.PrefetchScalarGridSpec(
            num_scalar_prefetch=0,
            grid=(n_row_tiles, n_col_tiles),
            in_specs=[
                pl.BlockSpec(chunk_block, lambda ri, fj: (0, ri, fj)),  # chunk1
                pl.BlockSpec(chunk_block, lambda ri, fj: (1, ri, fj)),  # chunk2
                pl.BlockSpec(noise_block, lambda ri, fj: (0, 0, 0)),    # eps1
                pl.BlockSpec(noise_block, lambda ri, fj: (1, 0, 0)),    # eps2
            ],
            out_specs=pl.BlockSpec(memory_space=pltpu.MemorySpace.SMEM),
            scratch_shapes=[pltpu.VMEM((tile_rows, _LANE), jnp.float32)]),
        compiler_params=pltpu.CompilerParams(
            # Shared accumulator across both grid axes -> "arbitrary".
            dimension_semantics=("arbitrary", "arbitrary"),
            vmem_limit_bytes=vmem_limit),
        cost_estimate=cost,
    )(lay3, lay3, noi3, noi3)
    return out[0]


def div_loss_ref(noises, layer):
    """Pure-JAX reference for correctness checking."""
    if layer.ndim > 2:
        layer = layer.reshape((layer.shape[0], -1))
    if noises.ndim > 2:
        noises = noises.reshape((noises.shape[0], -1))
    half = layer.shape[0] // 2
    num = jnp.mean(jnp.abs(layer[:half].astype(jnp.float32)
                           - layer[half:2 * half].astype(jnp.float32)))
    den = jnp.mean(jnp.abs(noises[:half].astype(jnp.float32)
                           - noises[half:2 * half].astype(jnp.float32)))
    lz = num / den
    return 1.0 / (lz + 1e-5)


if __name__ == "__main__":
    key = jax.random.PRNGKey(0)
    k1, k2, k3, k4, k5, k6, k7, k8 = jax.random.split(key, 8)

    # 1) Small generator activation (NCHW) + its latent noise batch, f32.
    batch, channels, spatial, nz = 2, 4, 16, 32
    layer = jax.random.normal(k1, (batch, channels, spatial, spatial), jnp.float32)
    noises = jax.random.normal(k2, (batch, nz), jnp.float32)
    loss = jax.block_until_ready(div_loss(noises, layer))
    ref = jax.block_until_ready(div_loss_ref(noises, layer))
    assert jnp.allclose(loss, ref, rtol=1e-5, atol=1e-6), (loss, ref)

    # 2) bf16 inputs, ragged feature dim after repacking -> in-kernel col mask.
    layer2 = jax.random.normal(k3, (4, 8, 24, 24), jnp.float32).astype(jnp.bfloat16)
    noises2 = jax.random.normal(k4, (4, nz), jnp.float32).astype(jnp.bfloat16)
    loss2 = jax.block_until_ready(div_loss(noises2, layer2))
    ref2 = jax.block_until_ready(div_loss_ref(noises2, layer2))
    assert jnp.allclose(loss2, ref2, rtol=2e-2, atol=1e-3), (loss2, ref2)

    # 3) Tiny explicit budget -> multi-step feature pipeline + unrolled fold.
    layer3 = jax.random.normal(k5, (2, 8, 64, 64), jnp.float32)
    noises3 = jax.random.normal(k6, (2, nz), jnp.float32)
    loss3 = jax.block_until_ready(div_loss(noises3, layer3,
                                           vmem_budget_bytes=256 * 1024))
    ref3 = jax.block_until_ready(div_loss_ref(noises3, layer3))
    assert jnp.allclose(loss3, ref3, rtol=1e-5, atol=1e-6), (loss3, ref3)

    # 4) Large batch half + tiny budget -> row-tiling path (2-D grid).
    layer4 = jax.random.normal(k7, (128, 512), jnp.float32)
    noises4 = jax.random.normal(k8, (128, 16), jnp.float32)
    loss4 = jax.block_until_ready(div_loss(noises4, layer4,
                                           vmem_budget_bytes=64 * 1024))
    ref4 = jax.block_until_ready(div_loss_ref(noises4, layer4))
    assert jnp.allclose(loss4, ref4, rtol=1e-5, atol=1e-6), (loss4, ref4)

    print("KERNEL_OK")
</pallas_src>

<mosaic_0001>
module attributes {stable_mosaic.version = 11 : i64} {
  func.func @_div_loss_kernel(%arg0: i32, %arg1: i32, %arg2: memref<1x8x128xf32, #tpu.memory_space<vmem>>, %arg3: memref<1x8x128xf32, #tpu.memory_space<vmem>>, %arg4: memref<1x1x32xf32, #tpu.memory_space<vmem>>, %arg5: memref<1x1x32xf32, #tpu.memory_space<vmem>>, %arg6: memref<1xf32, #tpu.memory_space<smem>>, %arg7: memref<8x128xf32, #tpu.memory_space<vmem>>) attributes {dimension_semantics = [#tpu.dimension_semantics<arbitrary>, #tpu.dimension_semantics<arbitrary>], iteration_bounds = array<i64: 1, 1>, scalar_prefetch = 0 : i64, scratch_operands = 1 : i64, tpu.core_type = #tpu.core_type<tc>, window_params = [{transform_indices = @transform_0, window_bounds = array<i64: 1, 8, 128>}, {transform_indices = @transform_1, window_bounds = array<i64: 1, 8, 128>}, {transform_indices = @transform_2, window_bounds = array<i64: 1, 1, 32>}, {transform_indices = @transform_3, window_bounds = array<i64: 1, 1, 32>}, {transform_indices = @transform_4, window_bounds = array<i64: 1>}]} {
    %c0_i32 = arith.constant 0 : i32
    %0 = arith.cmpi eq, %arg0, %c0_i32 : i32
    %c0_i32_0 = arith.constant 0 : i32
    %1 = arith.cmpi eq, %arg1, %c0_i32_0 : i32
    %2 = arith.andi %0, %1 : i1
    %3 = arith.extui %2 : i1 to i32
    %c0_i32_1 = arith.constant 0 : i32
    %4 = arith.cmpi ne, %3, %c0_i32_1 : i32
    scf.if %4 {
      %cst = arith.constant 0.000000e+00 : f32
      %19 = vector.broadcast %cst : f32 to vector<8x128xf32>
      %c0_14 = arith.constant 0 : index
      %c0_15 = arith.constant 0 : index
      %20 = vector.load %arg7[%c0_14, %c0_15] : memref<8x128xf32, #tpu.memory_space<vmem>>, vector<8x128xf32>
      tpu.vector_store %arg7[%c0_14, %c0_15], %19 {strides = array<i32>} : memref<8x128xf32, #tpu.memory_space<vmem>>, vector<8x128xf32>,
    } else {
    }
    %c0 = arith.constant 0 : index
    %c0_2 = arith.constant 0 : index
    %c0_3 = arith.constant 0 : index
    %5 = vector.load %arg2[%c0, %c0_2, %c0_3] : memref<1x8x128xf32, #tpu.memory_space<vmem>>, vector<1x8x128xf32>
    %6 = vector.shape_cast %5 : vector<1x8x128xf32> to vector<8x128xf32>
    %c0_4 = arith.constant 0 : index
    %c0_5 = arith.constant 0 : index
    %c0_6 = arith.constant 0 : index
    %7 = vector.load %arg3[%c0_4, %c0_5, %c0_6] : memref<1x8x128xf32, #tpu.memory_space<vmem>>, vector<1x8x128xf32>
    %8 = vector.shape_cast %7 : vector<1x8x128xf32> to vector<8x128xf32>
    %9 = arith.subf %6, %8 : vector<8x128xf32>
    %10 = math.absf %9 : vector<8x128xf32>
    %c0_7 = arith.constant 0 : index
    %c0_8 = arith.constant 0 : index
    %11 = vector.load %arg7[%c0_7, %c0_8] : memref<8x128xf32, #tpu.memory_space<vmem>>, vector<8x128xf32>
    %12 = arith.addf %11, %10 : vector<8x128xf32>
    %c0_9 = arith.constant 0 : index
    %c0_10 = arith.constant 0 : index
    %13 = vector.load %arg7[%c0_9, %c0_10] : memref<8x128xf32, #tpu.memory_space<vmem>>, vector<8x128xf32>
    tpu.vector_store %arg7[%c0_9, %c0_10], %12 {strides = array<i32>} : memref<8x128xf32, #tpu.memory_space<vmem>>, vector<8x128xf32>,
    %c0_i32_11 = arith.constant 0 : i32
    %14 = arith.cmpi eq, %arg0, %c0_i32_11 : i32
    %c0_i32_12 = arith.constant 0 : i32
    %15 = arith.cmpi eq, %arg1, %c0_i32_12 : i32
    %16 = arith.andi %14, %15 : i1
    %17 = arith.extui %16 : i1 to i32
    %c0_i32_13 = arith.constant 0 : i32
    %18 = arith.cmpi ne, %17, %c0_i32_13 : i32
    scf.if %18 {
      %c0_14 = arith.constant 0 : index
      %c0_15 = arith.constant 0 : index
      %19 = vector.load %arg7[%c0_14, %c0_15] : memref<8x128xf32, #tpu.memory_space<vmem>>, vector<8x128xf32>
      %20 = vector.shape_cast %19 : vector<8x128xf32> to vector<1x8x128xf32>
      %cst = arith.constant dense<0.000000e+00> : vector<1xf32>
      %21 = vector.multi_reduction <add>, %20, %cst [1, 2] : vector<1x8x128xf32> to vector<1xf32>
      %22 = vector.shape_cast %21 : vector<1xf32> to vector<1x1x1xf32>
      %23 = vector.extract %22[0, 0, 0] : f32 from vector<1x1x1xf32>
      %cst_16 = arith.constant 1.024000e+03 : f32
      %24 = arith.divf %23, %cst_16 : f32
      %c0_17 = arith.constant 0 : index
      %c0_18 = arith.constant 0 : index
      %c0_19 = arith.constant 0 : index
      %25 = vector.load %arg4[%c0_17, %c0_18, %c0_19] : memref<1x1x32xf32, #tpu.memory_space<vmem>>, vector<1x1x32xf32>
      %26 = vector.shape_cast %25 : vector<1x1x32xf32> to vector<1x32xf32>
      %c0_20 = arith.constant 0 : index
      %c0_21 = arith.constant 0 : index
      %c0_22 = arith.constant 0 : index
      %27 = vector.load %arg5[%c0_20, %c0_21, %c0_22] : memref<1x1x32xf32, #tpu.memory_space<vmem>>, vector<1x1x32xf32>
      %28 = vector.shape_cast %27 : vector<1x1x32xf32> to vector<1x32xf32>
      %29 = arith.subf %26, %28 : vector<1x32xf32>
      %30 = math.absf %29 : vector<1x32xf32>
      %31 = vector.shape_cast %30 : vector<1x32xf32> to vector<1x1x32xf32>
      %cst_23 = arith.constant dense<0.000000e+00> : vector<1xf32>
      %32 = vector.multi_reduction <add>, %31, %cst_23 [1, 2] : vector<1x1x32xf32> to vector<1xf32>
      %33 = vector.shape_cast %32 : vector<1xf32> to vector<1x1x1xf32>
      %34 = vector.extract %33[0, 0, 0] : f32 from vector<1x1x1xf32>
      %cst_24 = arith.constant 3.200000e+01 : f32
      %35 = arith.divf %34, %cst_24 : f32
      %36 = arith.divf %24, %35 : f32
      %cst_25 = arith.constant 9.99999974E-6 : f32
      %37 = arith.addf %36, %cst_25 : f32
      %cst_26 = arith.constant 1.000000e+00 : f32
      %38 = arith.divf %cst_26, %37 : f32
      %c0_27 = arith.constant 0 : index
      %39 = memref.load %arg6[%c0_27] : memref<1xf32, #tpu.memory_space<smem>>
      memref.store %38, %arg6[%c0_27] : memref<1xf32, #tpu.memory_space<smem>>
    } else {
    }
    return
  }
  func.func @transform_0(%arg0: i32, %arg1: i32) -> (i32, i32, i32) {
    %c0_i32 = arith.constant 0 : i32
    %c0_i32_0 = arith.constant 0 : i32
    return %c0_i32, %arg0, %arg1 : i32, i32, i32
  }
  func.func @transform_1(%arg0: i32, %arg1: i32) -> (i32, i32, i32) {
    %c1_i32 = arith.constant 1 : i32
    %c0_i32 = arith.constant 0 : i32
    return %c1_i32, %arg0, %arg1 : i32, i32, i32
  }
  func.func @transform_2(%arg0: i32, %arg1: i32) -> (i32, i32, i32) {
    %c0_i32 = arith.constant 0 : i32
    %c0_i32_0 = arith.constant 0 : i32
    %c0_i32_1 = arith.constant 0 : i32
    %c0_i32_2 = arith.constant 0 : i32
    return %c0_i32, %c0_i32_0, %c0_i32_1 : i32, i32, i32
  }
  func.func @transform_3(%arg0: i32, %arg1: i32) -> (i32, i32, i32) {
    %c1_i32 = arith.constant 1 : i32
    %c0_i32 = arith.constant 0 : i32
    %c0_i32_0 = arith.constant 0 : i32
    %c0_i32_1 = arith.constant 0 : i32
    return %c1_i32, %c0_i32, %c0_i32_0 : i32, i32, i32
  }
  func.func @transform_4(%arg0: i32, %arg1: i32) -> i32 {
    %c0_i32 = arith.constant 0 : i32
    %c0_i32_0 = arith.constant 0 : i32
    return %c0_i32 : i32
  }
}

</mosaic_0001>

<bundles_post_ra>
// kernel: tpu_custom_call.1
= control target key start
LH: loop header
LB: loop body
LE: loop exit
PB: predicated region body
PF: predicated region fallthrough
CT: control target
= control target key end

     0   :  { %9 = vsyncpa [#allocation4], 0  ;;  %s273_s0 = inlined_call_operand.hbm [shape: f32[2,8,128], index: 0, kind: input, shape index: {}]   ;;  %s274_s1 = inlined_call_operand.hbm [shape: f32[2,8,128], index: 1, kind: input, shape index: {}]   ;;  %s275_s2 = inlined_call_operand.vmem [shape: f32[2,1,32], index: 2, kind: input, shape index: {}]   ;;  %s276_s3 = inlined_call_operand.vmem [shape: f32[2,1,32], index: 3, kind: input, shape index: {}]   ;;  %s277_s4 = inlined_call_operand.hbm [shape: f32[1], index: 4, kind: output, shape index: {}]  }
   0x1   :  { %10 = vsyncpa [#allocation7], 0 }
   0x2   :  { %11 = vsyncpa [#allocation5], 0  ;;  %s228_s17 = scalar_lea.hbm %s274_s1, 128  ;;  %s197_s18 = smov [#allocation3]  }
   0x3   :  { %s18_s19 = sshll.u32 %s197_s18, 4  ;;  %s198_s20 = smov [#allocation6]   ;;  %s19_s19 = int_to_ptr.vmem [resolvable:$true] %s18_s19 }
   0x4   :  { %s29_s21 = sshll.u32 %s198_s20, 4  ;;  %s134_s24 = scalar_lea.hbm %s273_s0, 128  ;;  %s30_s21 = int_to_ptr.vmem [resolvable:$true] %s29_s21 }
   0x5   :  { %p135_p0 = scmp.ne.s32.totalorder %s273_s0, %s134_s24  ;;  %s136_s29 = scalar_lea.hbm %s273_s0, 256 }
   0x6   :  { %p137_p1 = scmp.lt.u32.totalorder %s136_s29, %s134_s24  ;;  %p138_p2 = scmp.lt.u32.totalorder %s134_s24, %s273_s0 }
   0x8   :  { %p139_p3 = por %p138_p2, %p137_p1 }
   0xa   :  { %p140_p4 = pnand %p139_p3, %p135_p0 }
   0xc   :  { %143 = shalt.err (!%p140_p4)
}
   0xd   :  { %s144_s6 = scalar_lea.vmem %s19_s19, 128  ;;  %p149_p6 = scmp.lt.s32.totalorder %s19_s19, %s19_s19 }
   0xe   :  { %p145_p5 = scmp.ne.s32.totalorder %s19_s19, %s144_s6  ;;  %p150_p7 = scmp.lt.s32.totalorder %s144_s6, %s144_s6 }
  0x10   :  { %p151_p8 = por %p150_p7, %p149_p6 }
  0x12   :  { %p152_p9 = pnand %p151_p8, %p145_p5 }
  0x14   :  { %155 = shalt.err (!%p152_p9)
}
  0x15   :  { %21 = dma.hbm_to_vmem [thread:$0]  %s273_s0, 128, %s19_s19, [#allocation4]  }
  0x16   :  { %s180_s11 = scalar_lea.hbm %s274_s1, 256  ;;  %p159_p11 = scmp.lt.u32.totalorder %s228_s17, %s274_s1 }
  0x17   :  { %p157_p10 = scmp.ne.s32.totalorder %s228_s17, %s180_s11  ;;  %p160_p12 = scmp.lt.u32.totalorder %s180_s11, %s180_s11 }
  0x18   :  { %p162_p0 = scmp.lt.u32.totalorder %s180_s11, %s228_s17 }
  0x19   :  { %p161_p13 = por %p160_p12, %p159_p11 }
  0x1b   :  { %p163_p1 = por %p162_p0, %p161_p13 }
  0x1d   :  { %p164_p2 = pnand %p163_p1, %p157_p10 }
  0x1f   :  { %167 = shalt.err (!%p164_p2)
}
  0x20   :  { %s168_s14 = scalar_lea.vmem %s30_s21, 128  ;;  %p173_p4 = scmp.lt.s32.totalorder %s30_s21, %s30_s21 }
  0x21   :  { %p169_p3 = scmp.ne.s32.totalorder %s30_s21, %s168_s14  ;;  %p174_p5 = scmp.lt.s32.totalorder %s168_s14, %s168_s14 }
  0x23   :  { %p175_p6 = por %p174_p5, %p173_p4 }
  0x25   :  { %p176_p7 = pnand %p175_p6, %p169_p3 }
  0x27   :  { %179 = shalt.err (!%p176_p7)
}
  0x28   :  { %32 = dma.hbm_to_vmem [thread:$0]  %s228_s17, 128, %s30_s21, [#allocation7]  }
  0x29   :  { %191 = dma.done.wait [#allocation4], 128  }
  0x2a   :  { %192 = vsyncadd [#allocation4], 4294967168 }
  0x2b   :  { %193 = dma.done.wait [#allocation7], 128  }
  0x2c   :  { %194 = vsyncadd [#allocation7], 4294967168  ;;  %v53_v0 = vld [vmem:[#allocation3] sm:$0xff]  ;;  %v54_v1 = vld [vmem:[#allocation6] sm:$0xff]  ;;  %vm79_vm0 = vcmask 253952   ;;  %s181_s25 = scalar_lea.hbm %s277_s4, 16 }
  0x2d   :  { %v75_v2 = vld [vmem:[%s275_s2] sm:$0x1]  ;;  %v55_v3 = vsub.f32 %v53_v0, %v54_v1  ;;  %v118_v4 = vld [vmem:[%s276_s3 + $0x1] sm:$0x1]  ;;  %p182_p8 = scmp.ne.s32.totalorder %s277_s4, %s181_s25  ;;  %p185_p9 = scmp.lt.u32.totalorder %s181_s25, %s277_s4 }
  0x2e   :  { %v77_v5 = vsub.f32 %v75_v2, %v118_v4 }
  0x2f   :  { %v56_v6 = vand.u32 2147483647, %v55_v3  ;;  %p187_p10 = pnand %p185_p9, %p182_p8 }
  0x30   :  { %v78_v7 = vand.u32 2147483647, %v77_v5 }
  0x31   :  { %63 = vadd.xlane.f32.xlu0 %v56_v6 }
  0x32   :  { %v80_v8 = vsel %vm79_vm0, %v78_v7, 0.0 }
  0x35   :  { %81 = vadd.xlane.f32.xlu0 %v80_v8 }
  0xbe   :  { %v64_v9 = vpop.xlane.xlu0 %63 }
  0xbf   :  { %v65_v10 = vrot.slane %v64_v9, 4 }
  0xc1   :  { %v66_v11 = vadd.f32 %v65_v10, %v64_v9 }
  0xc2   :  { %v82_v12 = vpop.xlane.xlu0 %81 }
  0xc3   :  { %v67_v13 = vrot.slane %v66_v11, 2  ;;  %v83_v14 = vrot.slane %v82_v12, 4 }
  0xc5   :  { %v84_v15 = vadd.f32 %v83_v14, %v82_v12  ;;  %v68_v16 = vadd.f32 %v67_v13, %v66_v11 }
  0xc7   :  { %v85_v17 = vrot.slane %v84_v15, 2  ;;  %v69_v18 = vrot.slane %v68_v16, 1 }
  0xc9   :  { %v86_v19 = vadd.f32 %v85_v17, %v84_v15  ;;  %v70_v20 = vadd.f32 %v69_v18, %v68_v16 }
  0xcb   :  { %119 = vpush %v70_v20  ;;  %v87_v21 = vrot.slane %v86_v19, 1 }
  0xcd   :  { %v88_v22 = vadd.f32 %v87_v21, %v86_v19 }
  0xcf   :  { %121 = vpush %v88_v22 }
  0xfc   :  { %s120_s2 = spop %119 }
  0xfd   :  { %s74_s18 = smul.f32 0.0009765625, %s120_s2 }
 0x100   :  { %s122_s3 = spop %121 }
 0x101   :  { %s92_s17 = smul.f32 0.03125, %s122_s3 }
 0x103   :  { %v93_v23 = vstv %s92_s17 }
 0x104   :  { %130 = vrcp.f32 %v93_v23 }
 0x10e   :  { %v131_v24 = vpop.eup %130 }
 0x10f   :  { %123 = vpush %v131_v24 }
 0x140   :  { %s124_s19 = spop %123 }
 0x141   :  { %s96_s20 = smul.f32 %s124_s19, %s74_s18 }
 0x143   :  { %s97_s21 = sadd.f32 1e-05, %s96_s20 }
 0x145   :  { %v98_v25 = vstv %s97_s21 }
 0x146   :  { %132 = vrcp.f32 %v98_v25 }
 0x150   :  { %v133_v26 = vpop.eup %132 }
 0x151   :  { %125 = vpush %v133_v26 }
 0x182   :  { %s126_s22 = spop %125 }
 0x183   :  { %102 = sst [smem:[#allocation8]] %s126_s22 }
 0x184   :  { %190 = shalt.err (!%p187_p10)
}
 0x185   :  { %s199_s30 = smov [#allocation8]  }
 0x186   :  { %110 = dma.smem_to_hbm %s199_s30, 16, %s277_s4, [#allocation5]  }
 0x187   :  { %195 = dma.done.wait [#allocation5], 16  }
 0x188   :  { %196 = vsyncadd [#allocation5], 4294967280 }
 0x189   :  { %114 = sfence }
 0x18a   :  { %115 = vsyncpa [#allocation4], 1 }
 0x18b   :  { %116 = vsyncpa [#allocation7], 1 }
 0x18c   :  { %117 = vsyncpa [#allocation5], 1 }

</bundles_post_ra>
